<compile_context>
chip_gen: v7x
topology: tpu7x:2x2x1
jax: 0.10.0
libtpu: 0.0.40
codegen_flags: <defaults>
</compile_context>

<pallas_src>
import math
import functools

import jax
import jax.numpy as jnp
from jax.experimental import pallas as pl
from jax.experimental.pallas import tpu as pltpu


# ---------------------------------------------------------------------------
# Glue: build the (max_len, emb_size) positional-encoding table (deterministic)
# ---------------------------------------------------------------------------
def make_pos_emb(emb_size: int, max_len: int = 64, dtype=jnp.float32):
    den = jnp.exp(
        -jnp.arange(0, emb_size, 2, dtype=jnp.float32) * math.log(10000.0) / emb_size
    )
    pos = jnp.arange(0, max_len, dtype=jnp.float32).reshape(max_len, 1)
    ang = pos * den  # (max_len, emb_size // 2)
    pe = jnp.zeros((max_len, emb_size), dtype=jnp.float32)
    pe = pe.at[:, 0::2].set(jnp.sin(ang))
    pe = pe.at[:, 1::2].set(jnp.cos(ang))
    return pe.astype(dtype)  # (max_len, emb_size)


# ---------------------------------------------------------------------------
# Pallas kernels (pure element-wise on lane-dense 2-D tiles)
# ---------------------------------------------------------------------------
def _posenc_kernel(x_ref, pos_ref, o_ref):
    o_ref[...] = (x_ref[...] + pos_ref[...]).astype(o_ref.dtype)


def _posenc_dropout_kernel(x_ref, pos_ref, u_ref, o_ref, *, p: float, scale: float):
    y = x_ref[...] + pos_ref[...]
    keep = u_ref[...] >= p                      # keep with probability 1 - p
    o_ref[...] = jnp.where(keep, y * scale, 0.0).astype(o_ref.dtype)


# ---------------------------------------------------------------------------
# Block-size helper: biggest row tile <= ~2 MiB that divides `rows`
# (sublane-aligned when tiling).  Toy shapes collapse to a single grid step.
# ---------------------------------------------------------------------------
def _pick_block_rows(rows: int, row_bytes: int, target_bytes: int = 2 * 1024 * 1024):
    if rows * row_bytes <= target_bytes:
        return rows
    cap = max(1, target_bytes // row_bytes)
    start = (min(cap, rows) // 8) * 8
    for br in range(start, 0, -8):
        if rows % br == 0:
            return br
    return rows


# ---------------------------------------------------------------------------
# Wrapper
# ---------------------------------------------------------------------------
def positional_encoding(token_emb, pos_emb, key=None, *, p: float = 0.2,
                        train: bool = True):
    """token_emb: (S, B, E); pos_emb: (max_len, E); returns (S, B, E)."""
    S, B, E = token_emb.shape
    dtype = token_emb.dtype
    N = S * B * E

    use_dropout = bool(train) and p > 0.0
    if use_dropout and p >= 1.0:                 # nn.Dropout(p=1.0) zeroes everything
        return jnp.zeros_like(token_emb)

    # Broadcast the positional table over batch once in plain XLA, then view
    # everything as a lane-dense 2-D slab: last dim = 128 lanes when the total
    # size allows, otherwise (S*B, E) with E on the lane axis.
    pos_full = jnp.broadcast_to(pos_emb[:S][:, None, :], (S, B, E)).astype(dtype)

    LANE = 128
    if N % LANE == 0:
        rows, cols = N // LANE, LANE
    else:
        rows, cols = S * B, E
    x2 = token_emb.reshape(rows, cols)
    p2 = pos_full.reshape(rows, cols)

    block_rows = _pick_block_rows(rows, cols * x2.dtype.itemsize)
    block = (block_rows, cols)
    idx = lambda i: (i, 0)

    in_specs = [pl.BlockSpec(block, idx), pl.BlockSpec(block, idx)]
    args = [x2, p2]

    if use_dropout:
        if key is None:
            key = jax.random.PRNGKey(0)
        u = jax.random.uniform(key, (rows, cols), dtype=jnp.float32)
        in_specs.append(pl.BlockSpec(block, idx))
        args.append(u)
        kernel = functools.partial(_posenc_dropout_kernel,
                                   p=float(p), scale=float(1.0 / (1.0 - p)))
    else:
        kernel = _posenc_kernel

    out2 = pl.pallas_call(
        kernel,
        out_shape=jax.ShapeDtypeStruct((rows, cols), dtype),
        grid_spec=pltpu.PrefetchScalarGridSpec(
            num_scalar_prefetch=0,
            grid=(rows // block_rows,),
            in_specs=in_specs,
            out_specs=pl.BlockSpec(block, idx),
        ),
        compiler_params=pltpu.CompilerParams(
            dimension_semantics=("parallel",)),   # independent tiles -> v7x dual-TC
    )(*args)

    return out2.reshape(S, B, E)


# ---------------------------------------------------------------------------
# Main
# ---------------------------------------------------------------------------
if __name__ == "__main__":
    S, B, E = 8, 2, 32          # seq_len, batch, emb_size (small, emb_size even)
    MAX_LEN = 64
    P_DROP = 0.2

    root = jax.random.PRNGKey(0)
    k_x, k_drop = jax.random.split(root)
    token_emb = jax.random.normal(k_x, (S, B, E), dtype=jnp.float32)
    pos_emb = make_pos_emb(E, max_len=MAX_LEN)

    # Training-mode forward (with dropout).
    out_train = positional_encoding(token_emb, pos_emb, key=k_drop,
                                    p=P_DROP, train=True)
    out_train = jax.block_until_ready(out_train)

    # Eval-mode forward (dropout is identity) -> check against pure-JAX reference.
    out_eval = positional_encoding(token_emb, pos_emb, key=None,
                                   p=P_DROP, train=False)
    out_eval = jax.block_until_ready(out_eval)
    ref_eval = token_emb + pos_emb[:S][:, None, :]

    assert out_train.shape == (S, B, E)
    assert jnp.allclose(out_eval, ref_eval, atol=1e-6), "eval-mode mismatch"

    # Training output must be either 0 (dropped) or reference * 1/(1-p) (kept).
    scale = 1.0 / (1.0 - P_DROP)
    ok = jnp.isclose(out_train, 0.0) | jnp.isclose(out_train, ref_eval * scale,
                                                   atol=1e-5)
    assert bool(jnp.all(ok)), "dropout-mode mismatch"

    print("KERNEL_OK")
</pallas_src>

<mosaic_0001>
module attributes {stable_mosaic.version = 11 : i64} {
  func.func @_posenc_dropout_kernel(%arg0: i32, %arg1: memref<4x128xf32, #tpu.memory_space<vmem>>, %arg2: memref<4x128xf32, #tpu.memory_space<vmem>>, %arg3: memref<4x128xf32, #tpu.memory_space<vmem>>, %arg4: memref<4x128xf32, #tpu.memory_space<vmem>>) attributes {dimension_semantics = [#tpu.dimension_semantics<parallel>], iteration_bounds = array<i64: 1>, scalar_prefetch = 0 : i64, scratch_operands = 0 : i64, tpu.core_type = #tpu.core_type<tc>, window_params = [{transform_indices = @transform_0, window_bounds = array<i64: 4, 128>}, {transform_indices = @transform_1, window_bounds = array<i64: 4, 128>}, {transform_indices = @transform_2, window_bounds = array<i64: 4, 128>}, {transform_indices = @transform_3, window_bounds = array<i64: 4, 128>}]} {
    %c0 = arith.constant 0 : index
    %c0_0 = arith.constant 0 : index
    %0 = vector.load %arg1[%c0, %c0_0] : memref<4x128xf32, #tpu.memory_space<vmem>>, vector<4x128xf32>
    %c0_1 = arith.constant 0 : index
    %c0_2 = arith.constant 0 : index
    %1 = vector.load %arg2[%c0_1, %c0_2] : memref<4x128xf32, #tpu.memory_space<vmem>>, vector<4x128xf32>
    %2 = arith.addf %0, %1 : vector<4x128xf32>
    %c0_3 = arith.constant 0 : index
    %c0_4 = arith.constant 0 : index
    %3 = vector.load %arg3[%c0_3, %c0_4] : memref<4x128xf32, #tpu.memory_space<vmem>>, vector<4x128xf32>
    %cst = arith.constant 2.000000e-01 : f32
    %4 = vector.broadcast %cst : f32 to vector<4x128xf32>
    %5 = arith.cmpf oge, %3, %4 : vector<4x128xf32>
    %cst_5 = arith.constant 1.250000e+00 : f32
    %6 = vector.broadcast %cst_5 : f32 to vector<4x128xf32>
    %7 = arith.mulf %2, %6 : vector<4x128xf32>
    %cst_6 = arith.constant 0.000000e+00 : f32
    %8 = vector.broadcast %cst_6 : f32 to vector<4x128xf32>
    %9 = arith.select %5, %7, %8 : vector<4x128xi1>, vector<4x128xf32>
    %c0_7 = arith.constant 0 : index
    %c0_8 = arith.constant 0 : index
    %10 = vector.load %arg4[%c0_7, %c0_8] : memref<4x128xf32, #tpu.memory_space<vmem>>, vector<4x128xf32>
    tpu.vector_store %arg4[%c0_7, %c0_8], %9 {strides = array<i32>} : memref<4x128xf32, #tpu.memory_space<vmem>>, vector<4x128xf32>,
    return
  }
  func.func @transform_0(%arg0: i32) -> (i32, i32) {
    %c0_i32 = arith.constant 0 : i32
    %c0_i32_0 = arith.constant 0 : i32
    return %arg0, %c0_i32 : i32, i32
  }
  func.func @transform_1(%arg0: i32) -> (i32, i32) {
    %c0_i32 = arith.constant 0 : i32
    %c0_i32_0 = arith.constant 0 : i32
    return %arg0, %c0_i32 : i32, i32
  }
  func.func @transform_2(%arg0: i32) -> (i32, i32) {
    %c0_i32 = arith.constant 0 : i32
    %c0_i32_0 = arith.constant 0 : i32
    return %arg0, %c0_i32 : i32, i32
  }
  func.func @transform_3(%arg0: i32) -> (i32, i32) {
    %c0_i32 = arith.constant 0 : i32
    %c0_i32_0 = arith.constant 0 : i32
    return %arg0, %c0_i32 : i32, i32
  }
}

</mosaic_0001>

<bundles_post_ra>
// kernel: tpu_custom_call.1
= control target key start
LH: loop header
LB: loop body
LE: loop exit
PB: predicated region body
PF: predicated region fallthrough
CT: control target
= control target key end

     0   :  { %8 = vsyncpa [#allocation3], 0  ;;  %s200_s0 = inlined_call_operand.hbm [shape: f32[4,128], index: 0, kind: input, shape index: {}]   ;;  %s201_s1 = inlined_call_operand.hbm [shape: f32[4,128], index: 1, kind: input, shape index: {}]   ;;  %s202_s2 = inlined_call_operand.vmem [shape: f32[4,128], index: 2, kind: input, shape index: {}]   ;;  %s203_s3 = inlined_call_operand.hbm [shape: f32[4,128], index: 3, kind: output, shape index: {}]  }
   0x1   :  { %9 = vsyncpa [#allocation6], 0 }
   0x2   :  { %10 = vsyncpa [#allocation4], 0  ;;  %s138_s12 = smov [#allocation2]   ;;  %s139_s14 = smov [#allocation5]  }
   0x3   :  { %s17_s13 = sshll.u32 %s138_s12, 4  ;;  %s27_s15 = sshll.u32 %s139_s14, 4  ;;  %s18_s13 = int_to_ptr.vmem [resolvable:$true] %s17_s13  ;;  %s28_s15 = int_to_ptr.vmem [resolvable:$true] %s27_s15 }
   0x4   :  { %s66_s18 = scalar_lea.hbm %s200_s0, 64 }
   0x5   :  { %p67_p0 = scmp.ne.s32.totalorder %s200_s0, %s66_s18  ;;  %p70_p1 = scmp.lt.u32.totalorder %s66_s18, %s200_s0 }
   0x7   :  { %p72_p2 = pnand %p70_p1, %p67_p0 }
   0x9   :  { %75 = shalt.err (!%p72_p2)
}
   0xa   :  { %s76_s23 = scalar_lea.vmem %s18_s13, 64  ;;  %p81_p4 = scmp.lt.s32.totalorder %s18_s13, %s18_s13 }
   0xb   :  { %p77_p3 = scmp.ne.s32.totalorder %s18_s13, %s76_s23  ;;  %p82_p5 = scmp.lt.s32.totalorder %s76_s23, %s76_s23 }
   0xd   :  { %p83_p6 = por %p82_p5, %p81_p4 }
   0xf   :  { %p84_p7 = pnand %p83_p6, %p77_p3 }
  0x11   :  { %87 = shalt.err (!%p84_p7)
}
  0x12   :  { %20 = dma.hbm_to_vmem [thread:$0]  %s200_s0, 64, %s18_s13, [#allocation3]  }
  0x13   :  { %s88_s28 = scalar_lea.hbm %s201_s1, 64 }
  0x14   :  { %p89_p8 = scmp.ne.s32.totalorder %s201_s1, %s88_s28  ;;  %p92_p9 = scmp.lt.u32.totalorder %s88_s28, %s201_s1 }
  0x16   :  { %p94_p10 = pnand %p92_p9, %p89_p8 }
  0x18   :  { %97 = shalt.err (!%p94_p10)
}
  0x19   :  { %s98_s6 = scalar_lea.vmem %s28_s15, 64  ;;  %p103_p12 = scmp.lt.s32.totalorder %s28_s15, %s28_s15 }
  0x1a   :  { %p99_p11 = scmp.ne.s32.totalorder %s28_s15, %s98_s6  ;;  %p104_p13 = scmp.lt.s32.totalorder %s98_s6, %s98_s6 }
  0x1c   :  { %p105_p0 = por %p104_p13, %p103_p12 }
  0x1e   :  { %p106_p1 = pnand %p105_p0, %p99_p11 }
  0x20   :  { %109 = shalt.err (!%p106_p1)
}
  0x21   :  { %30 = dma.hbm_to_vmem [thread:$0]  %s201_s1, 64, %s28_s15, [#allocation6]  }
  0x22   :  { %132 = dma.done.wait [#allocation3], 64  }
  0x23   :  { %133 = vsyncadd [#allocation3], 4294967232 }
  0x24   :  { %134 = dma.done.wait [#allocation6], 64  }
  0x25   :  { %135 = vsyncadd [#allocation6], 4294967232  ;;  %v39_v0 = vld [vmem:[#allocation2] sm:$0xf]  ;;  %v40_v1 = vld [vmem:[#allocation5] sm:$0xf] }
  0x26   :  { %v42_v2 = vld [vmem:[%s202_s2] sm:$0xf]  ;;  %v41_v3 = vadd.f32 %v40_v1, %v39_v0  ;;  %s140_s10 = smov [#allocation7]  }
  0x27   :  { %s53_s11 = sshll.u32 %s140_s10, 4  ;;  %vm43_vm0 = vcmp.ge.f32.partialorder %v42_v2, 0.2  ;;  %s54_s11 = int_to_ptr.vmem [resolvable:$true] %s53_s11 }
  0x28   :  { %v44_v4 = vmul.f32 1.25, %v41_v3  ;;  %s110_s12 = scalar_lea.vmem %s54_s11, 64  ;;  %p115_p3 = scmp.lt.s32.totalorder %s54_s11, %s54_s11 }
  0x29   :  { %p111_p2 = scmp.ne.s32.totalorder %s54_s11, %s110_s12  ;;  %p116_p4 = scmp.lt.s32.totalorder %s110_s12, %s110_s12 }
  0x2a   :  { %v45_v5 = vsel %vm43_vm0, %v44_v4, 0.0 }
  0x2b   :  { %46 = vst [vmem:[#allocation7] sm:$0xf] %v45_v5  ;;  %p117_p5 = por %p116_p4, %p115_p3 }
  0x2d   :  { %p118_p6 = pnand %p117_p5, %p111_p2 }
  0x2f   :  { %121 = shalt.err (!%p118_p6)
}
  0x30   :  { %s122_s14 = scalar_lea.hbm %s203_s3, 64 }
  0x31   :  { %p123_p7 = scmp.ne.s32.totalorder %s203_s3, %s122_s14  ;;  %p126_p8 = scmp.lt.u32.totalorder %s122_s14, %s203_s3 }
  0x33   :  { %p128_p9 = pnand %p126_p8, %p123_p7 }
  0x35   :  { %131 = shalt.err (!%p128_p9)
}
  0x36   :  { %56 = dma.vmem_to_hbm [thread:$0]  %s54_s11, 64, %s203_s3, [#allocation4]  }
  0x37   :  { %136 = dma.done.wait [#allocation4], 64  }
  0x38   :  { %137 = vsyncadd [#allocation4], 4294967232 }
  0x39   :  { %60 = vsyncpa [#allocation3], 1 }
  0x3a   :  { %61 = vsyncpa [#allocation6], 1 }
  0x3b   :  { %62 = vsyncpa [#allocation4], 1 }

</bundles_post_ra>
